<compile_context>
chip_gen: v7x
topology: tpu7x:2x2x1
jax: 0.10.0
libtpu: 0.0.40
codegen_flags: <defaults>
</compile_context>

<pallas_src>
import functools

import jax
import jax.numpy as jnp
from jax import lax
from jax.experimental import pallas as pl
from jax.experimental.pallas import tpu as pltpu


def _round_up(x, m):
    return ((x + m - 1) // m) * m


def _vmem_capacity_bytes():
    """Physical VMEM per TensorCore; conservative 64 MiB fallback (v7x)."""
    try:
        info = pltpu.get_tpu_info()
        cap = getattr(info, "vmem_capacity_bytes", None)
        if cap:
            return int(cap)
    except Exception:
        pass
    return 64 * 1024 * 1024


def _query_tile_cap(n, c, c8p, attn_itemsize, x_itemsize, vmem_bytes):
    """Largest query tile that keeps the working set inside ~45% of VMEM."""
    budget = int(vmem_bytes * 0.45)
    # Resident (full-N) buffers: x block (double-buffered), bf16 k/v caches, weights.
    fixed = 2 * n * c * x_itemsize + n * (c8p + c) * 2 + 2 * c * (2 * c8p + c) * 2
    # Per-query-row: double-buffered attn out block + f32 energy/exp/attn slabs
    # + out block + q/o rows.
    per_row = n * (2 * attn_itemsize + 3 * 4) + 2 * c * x_itemsize + (c8p + c) * 4
    cap = (budget - fixed) // max(per_row, 1)
    cap = max(128, min(1024, (cap // 128) * 128))
    return cap


def _choose_tiling(n, cap):
    """Return (n_padded, query_tile) with query_tile | n_padded and MXU-friendly shapes."""
    if n <= cap:
        return n, n                      # single tile, block == full array dims
    for t in sorted({cap, 512, 256, 128}, reverse=True):
        if t <= cap and n % t == 0:
            return n, t
    # Awkward N: pad up to a 128-aligned tile multiple instead of tiny/full tiles.
    t = min(256, cap)
    return _round_up(n, t), t


def _self_attn_kernel(x_ref, wq_ref, wkv_ref, bq_ref, bkv_ref, gamma_ref,
                      out_ref, attn_ref, k_sc, v_sc, *, tq, c8p, n_valid):
    f32 = jnp.float32
    bf16 = jnp.bfloat16
    qi = pl.program_id(1)

    # --- once per batch: fused key/value projection into bf16 VMEM scratch ---
    # (query-tile grid axis is "arbitrary", so this runs before all other tiles)
    @pl.when(qi == 0)
    def _():
        xb = x_ref[0].astype(bf16)                                          # (Np, C)
        kv = jnp.dot(xb, wkv_ref[...], preferred_element_type=f32) + bkv_ref[...]
        k_sc[...] = kv[:, :c8p].astype(bf16)                                # (Np, C8p)
        v_sc[...] = kv[:, c8p:].astype(bf16)                                # (Np, C)

    # --- per query tile ---
    start = pl.multiple_of(qi * tq, tq)
    x_q = x_ref[0, pl.ds(start, tq), :]                                     # (TQ, C)
    q = jnp.dot(x_q.astype(bf16), wq_ref[...],
                preferred_element_type=f32) + bq_ref[...]                   # (TQ, C8p)

    # energy[i, j] = q_i . k_j — contract last dims of both (no transpose relayout).
    energy = lax.dot_general(
        q.astype(bf16), k_sc[...],
        dimension_numbers=(((1,), (1,)), ((), ())),
        preferred_element_type=f32)                                         # (TQ, Np)

    n_pad = energy.shape[-1]
    if n_valid < n_pad:                                                     # mask padded keys
        col = lax.broadcasted_iota(jnp.int32, energy.shape, 1)
        energy = jnp.where(col < n_valid, energy, jnp.float32(-1e30))

    # Numerically stable row softmax in f32; divide via EUP approx reciprocal.
    # TODO(synk): on v6e/v7x the exp could run in bf16 (2x EUP) if tolerances allow.
    m = jnp.max(energy, axis=-1, keepdims=True)
    e = jnp.exp(energy - m)
    attn = e * pl.reciprocal(jnp.sum(e, axis=-1, keepdims=True), approx=True)
    attn_ref[0] = attn.astype(attn_ref.dtype)

    # out[i, c] = sum_j attn[i, j] * v[j, c]  (== torch bmm(value, attn^T))
    o = jnp.dot(attn.astype(bf16), v_sc[...], preferred_element_type=f32)   # (TQ, C)

    gamma = gamma_ref[0]
    out_ref[0] = (gamma * o + x_q.astype(f32)).astype(out_ref.dtype)


def self_attn_forward(x_nchw, wq, bq, wk, bk, wv, bv, gamma, *,
                      query_tile=None, attn_dtype=jnp.float32):
    """x_nchw: (B, C, W, H).  1x1-conv weights given as (C_in, C_out) matrices."""
    B, C, W, H = x_nchw.shape
    N = W * H
    C8 = wq.shape[1]
    C8p = _round_up(max(C8, 128), 128)      # lane-dense q/k (padded cols are exactly zero)

    bf16 = jnp.bfloat16
    f32 = jnp.float32
    x_itemsize = jnp.dtype(x_nchw.dtype).itemsize
    attn_itemsize = jnp.dtype(attn_dtype).itemsize

    # Generation-aware tiling / VMEM limit (64 MiB v7x vs 128 MiB v5e/v6e).
    vmem_bytes = _vmem_capacity_bytes()
    if query_tile is not None:
        TQ = query_tile
        N_pad = _round_up(N, TQ)
    else:
        cap = _query_tile_cap(N, C, C8p, attn_itemsize, x_itemsize, vmem_bytes)
        N_pad, TQ = _choose_tiling(N, cap)
    assert N_pad % TQ == 0
    n_qt = N_pad // TQ
    vmem_limit = int(min(max(vmem_bytes * 0.65, 32 * 1024 * 1024), 112 * 1024 * 1024))

    # glue: NCHW -> (B, N, C); keep the caller's dtype in HBM (cast in-kernel).
    x_bnc = jnp.transpose(x_nchw.reshape(B, C, N), (0, 2, 1))
    if N_pad > N:
        x_bnc = jnp.pad(x_bnc, ((0, 0), (0, N_pad - N), (0, 0)))

    # Weights in bf16 (MXU operands); biases stay f32 (added post-accumulation).
    # Wk and Wv are fused into one matmul over the full x block.
    wq_p = jnp.pad(wq, ((0, 0), (0, C8p - C8))).astype(bf16)                # (C, C8p)
    wk_p = jnp.pad(wk, ((0, 0), (0, C8p - C8)))                             # (C, C8p)
    wkv = jnp.concatenate([wk_p, wv], axis=1).astype(bf16)                  # (C, C8p+C)
    bq_p = jnp.pad(bq, (0, C8p - C8)).reshape(1, C8p).astype(f32)
    bkv = jnp.concatenate([jnp.pad(bk, (0, C8p - C8)), bv]).reshape(1, C8p + C).astype(f32)
    gamma1 = jnp.asarray(gamma, f32).reshape(1)

    kernel = functools.partial(_self_attn_kernel, tq=TQ, c8p=C8p, n_valid=N)

    out_bnc, attn = pl.pallas_call(
        kernel,
        out_shape=(
            jax.ShapeDtypeStruct((B, N_pad, C), x_nchw.dtype),
            jax.ShapeDtypeStruct((B, N_pad, N_pad), attn_dtype),
        ),
        grid_spec=pltpu.PrefetchScalarGridSpec(
            num_scalar_prefetch=0,
            grid=(B, n_qt),
            in_specs=[
                pl.BlockSpec((1, N_pad, C), lambda b, q: (b, 0, 0)),     # x (resident per batch)
                pl.BlockSpec((C, C8p), lambda b, q: (0, 0)),             # Wq (padded)
                pl.BlockSpec((C, C8p + C), lambda b, q: (0, 0)),         # Wk|Wv fused
                pl.BlockSpec((1, C8p), lambda b, q: (0, 0)),             # bq (padded)
                pl.BlockSpec((1, C8p + C), lambda b, q: (0, 0)),         # bk|bv fused
                pl.BlockSpec(memory_space=pltpu.MemorySpace.SMEM),       # gamma scalar
            ],
            out_specs=[
                pl.BlockSpec((1, TQ, C), lambda b, q: (b, q, 0)),        # out (B, Np, C)
                pl.BlockSpec((1, TQ, N_pad), lambda b, q: (b, q, 0)),    # attention (B, Np, Np)
            ],
            scratch_shapes=[
                pltpu.VMEM((N_pad, C8p), bf16),                          # cached keys
                pltpu.VMEM((N_pad, C), bf16),                            # cached values
            ],
        ),
        compiler_params=pltpu.CompilerParams(
            # query axis must be "arbitrary": the pl.when(q==0) k/v-cache init
            # has to precede the other query tiles of the same batch.
            dimension_semantics=("parallel", "arbitrary"),
            vmem_limit_bytes=vmem_limit,
        ),
        # TODO(synk): for B==1 on v7x (2 TCs) split the query axis across cores
        # (each core building its own k/v cache) to avoid leaving a core idle.
    )(x_bnc, wq_p, wkv, bq_p, bkv, gamma1)

    # glue: strip padding, (B, N, C) -> NCHW
    out_nchw = jnp.transpose(out_bnc[:, :N, :], (0, 2, 1)).reshape(B, C, W, H)
    return out_nchw, attn[:, :N, :N]


def _reference(x_nchw, wq, bq, wk, bk, wv, bv, gamma):
    B, C, W, H = x_nchw.shape
    N = W * H
    hp = jax.lax.Precision.HIGHEST
    xf = x_nchw.reshape(B, C, N)                                          # (B, C, N)
    q = jnp.einsum('bcn,ck->bkn', xf, wq, precision=hp) + bq[None, :, None]
    k = jnp.einsum('bcn,ck->bkn', xf, wk, precision=hp) + bk[None, :, None]
    v = jnp.einsum('bcn,cd->bdn', xf, wv, precision=hp) + bv[None, :, None]
    energy = jnp.einsum('bki,bkj->bij', q, k, precision=hp)               # (B, N, N)
    attn = jax.nn.softmax(energy, axis=-1)
    out = jnp.einsum('bcj,bij->bci', v, attn, precision=hp)               # (B, C, N)
    return gamma * out.reshape(B, C, W, H) + x_nchw, attn


if __name__ == "__main__":
    key = jax.random.PRNGKey(0)
    B, C, W, H = 2, 16, 8, 8          # in_dim = 16 -> C//8 = 2
    C8 = C // 8
    N = W * H

    ks = jax.random.split(key, 8)
    x = jax.random.normal(ks[0], (B, C, W, H), jnp.float32)
    # 1x1 conv weights stored as (C_in, C_out) matrices (== torch weight[:, :, 0, 0].T)
    wq = jax.random.normal(ks[1], (C, C8), jnp.float32) * 0.1
    bq = jax.random.normal(ks[2], (C8,), jnp.float32) * 0.1
    wk = jax.random.normal(ks[3], (C, C8), jnp.float32) * 0.1
    bk = jax.random.normal(ks[4], (C8,), jnp.float32) * 0.1
    wv = jax.random.normal(ks[5], (C, C), jnp.float32) * 0.1
    bv = jax.random.normal(ks[6], (C,), jnp.float32) * 0.1
    # module inits gamma to 0; use a nonzero deterministic value so the
    # attention branch actually contributes to the output under test.
    gamma = jnp.float32(0.5)

    out, attn = self_attn_forward(x, wq, bq, wk, bk, wv, bv, gamma)
    out = jax.block_until_ready(out)
    attn = jax.block_until_ready(attn)

    ref_out, ref_attn = _reference(x, wq, bq, wk, bk, wv, bv, gamma)
    assert out.shape == (B, C, W, H) and attn.shape == (B, N, N)
    # bf16 MXU operands + approx reciprocal -> looser tolerances vs f32 reference
    assert jnp.allclose(out, ref_out, atol=2e-2, rtol=2e-2)
    assert jnp.allclose(attn, ref_attn, atol=5e-3, rtol=5e-2)

    print("KERNEL_OK")
</pallas_src>

<mosaic_0001>
module attributes {stable_mosaic.version = 11 : i64} {
  func.func @_self_attn_kernel(%arg0: i32, %arg1: i32, %arg2: memref<1x64x16xf32, #tpu.memory_space<vmem>>, %arg3: memref<16x128xbf16, #tpu.memory_space<vmem>>, %arg4: memref<16x144xbf16, #tpu.memory_space<vmem>>, %arg5: memref<1x128xf32, #tpu.memory_space<vmem>>, %arg6: memref<1x144xf32, #tpu.memory_space<vmem>>, %arg7: memref<1xf32, #tpu.memory_space<smem>>, %arg8: memref<1x64x16xf32, #tpu.memory_space<vmem>>, %arg9: memref<1x64x64xf32, #tpu.memory_space<vmem>>, %arg10: memref<64x128xbf16, #tpu.memory_space<vmem>>, %arg11: memref<64x16xbf16, #tpu.memory_space<vmem>>) attributes {dimension_semantics = [#tpu.dimension_semantics<parallel>, #tpu.dimension_semantics<arbitrary>], iteration_bounds = array<i64: 2, 1>, scalar_prefetch = 0 : i64, scratch_operands = 2 : i64, tpu.core_type = #tpu.core_type<tc>, window_params = [{transform_indices = @transform_0, window_bounds = array<i64: 1, 64, 16>}, {pipeline_mode = #tpu.pipeline_mode<synchronous>, transform_indices = @transform_1, window_bounds = array<i64: 16, 128>}, {pipeline_mode = #tpu.pipeline_mode<synchronous>, transform_indices = @transform_2, window_bounds = array<i64: 16, 144>}, {pipeline_mode = #tpu.pipeline_mode<synchronous>, transform_indices = @transform_3, window_bounds = array<i64: 1, 128>}, {pipeline_mode = #tpu.pipeline_mode<synchronous>, transform_indices = @transform_4, window_bounds = array<i64: 1, 144>}, {transform_indices = @transform_5, window_bounds = array<i64: 1>}, {transform_indices = @transform_6, window_bounds = array<i64: 1, 64, 16>}, {transform_indices = @transform_7, window_bounds = array<i64: 1, 64, 64>}]} {
    %c0_i32 = arith.constant 0 : i32
    %0 = arith.cmpi eq, %arg1, %c0_i32 : i32
    %1 = arith.extui %0 : i1 to i32
    %c0_i32_0 = arith.constant 0 : i32
    %2 = arith.cmpi ne, %1, %c0_i32_0 : i32
    scf.if %2 {
      %c0_21 = arith.constant 0 : index
      %c0_22 = arith.constant 0 : index
      %c0_23 = arith.constant 0 : index
      %40 = vector.load %arg2[%c0_21, %c0_22, %c0_23] : memref<1x64x16xf32, #tpu.memory_space<vmem>>, vector<1x64x16xf32>
      %41 = vector.shape_cast %40 : vector<1x64x16xf32> to vector<64x16xf32>
      %42 = arith.truncf %41 : vector<64x16xf32> to vector<64x16xbf16>
      %c0_24 = arith.constant 0 : index
      %c0_25 = arith.constant 0 : index
      %43 = vector.load %arg4[%c0_24, %c0_25] : memref<16x144xbf16, #tpu.memory_space<vmem>>, vector<16x144xbf16>
      %cst_26 = arith.constant dense<0.000000e+00> : vector<64x144xf32>
      %44 = tpu.matmul %42, %43, %cst_26 {dimension_numbers = #tpu.dot_dimension_numbers<[1], [0], [0], [1], [0, 0, 1, 1], [], []>} : vector<64x16xbf16>, vector<16x144xbf16>, vector<64x144xf32> -> vector<64x144xf32>
      %c0_27 = arith.constant 0 : index
      %c0_28 = arith.constant 0 : index
      %45 = vector.load %arg6[%c0_27, %c0_28] : memref<1x144xf32, #tpu.memory_space<vmem>>, vector<1x144xf32>
      %46 = vector.broadcast %45 : vector<1x144xf32> to vector<64x144xf32>
      %47 = arith.addf %44, %46 : vector<64x144xf32>
      %48 = vector.extract_strided_slice %47 {offsets = [0, 0], sizes = [64, 128], strides = [1, 1]} : vector<64x144xf32> to vector<64x128xf32>
      %49 = arith.truncf %48 : vector<64x128xf32> to vector<64x128xbf16>
      %c0_29 = arith.constant 0 : index
      %c0_30 = arith.constant 0 : index
      %50 = vector.load %arg10[%c0_29, %c0_30] : memref<64x128xbf16, #tpu.memory_space<vmem>>, vector<64x128xbf16>
      tpu.vector_store %arg10[%c0_29, %c0_30], %49 {strides = array<i32>} : memref<64x128xbf16, #tpu.memory_space<vmem>>, vector<64x128xbf16>,
      %51 = vector.extract_strided_slice %47 {offsets = [0, 128], sizes = [64, 16], strides = [1, 1]} : vector<64x144xf32> to vector<64x16xf32>
      %52 = arith.truncf %51 : vector<64x16xf32> to vector<64x16xbf16>
      %c0_31 = arith.constant 0 : index
      %c0_32 = arith.constant 0 : index
      %53 = vector.load %arg11[%c0_31, %c0_32] : memref<64x16xbf16, #tpu.memory_space<vmem>>, vector<64x16xbf16>
      tpu.vector_store %arg11[%c0_31, %c0_32], %52 {strides = array<i32>} : memref<64x16xbf16, #tpu.memory_space<vmem>>, vector<64x16xbf16>,
    } else {
    }
    %c64_i32 = arith.constant 64 : i32
    %3 = arith.muli %arg1, %c64_i32 : i32
    %4 = tpu.assume_multiple %3, 64 : i32
    %c0 = arith.constant 0 : index
    %5 = arith.index_cast %4 : i32 to index
    %c0_1 = arith.constant 0 : index
    %6 = vector.load %arg2[%c0, %5, %c0_1] : memref<1x64x16xf32, #tpu.memory_space<vmem>>, vector<1x64x16xf32>
    %7 = vector.shape_cast %6 : vector<1x64x16xf32> to vector<64x16xf32>
    %8 = arith.truncf %7 : vector<64x16xf32> to vector<64x16xbf16>
    %c0_2 = arith.constant 0 : index
    %c0_3 = arith.constant 0 : index
    %9 = vector.load %arg3[%c0_2, %c0_3] : memref<16x128xbf16, #tpu.memory_space<vmem>>, vector<16x128xbf16>
    %cst = arith.constant dense<0.000000e+00> : vector<64x128xf32>
    %10 = tpu.matmul %8, %9, %cst {dimension_numbers = #tpu.dot_dimension_numbers<[1], [0], [0], [1], [0, 0, 1, 1], [], []>} : vector<64x16xbf16>, vector<16x128xbf16>, vector<64x128xf32> -> vector<64x128xf32>
    %c0_4 = arith.constant 0 : index
    %c0_5 = arith.constant 0 : index
    %11 = vector.load %arg5[%c0_4, %c0_5] : memref<1x128xf32, #tpu.memory_space<vmem>>, vector<1x128xf32>
    %12 = vector.broadcast %11 : vector<1x128xf32> to vector<64x128xf32>
    %13 = arith.addf %10, %12 : vector<64x128xf32>
    %14 = arith.truncf %13 : vector<64x128xf32> to vector<64x128xbf16>
    %c0_6 = arith.constant 0 : index
    %c0_7 = arith.constant 0 : index
    %15 = vector.load %arg10[%c0_6, %c0_7] : memref<64x128xbf16, #tpu.memory_space<vmem>>, vector<64x128xbf16>
    %cst_8 = arith.constant dense<0.000000e+00> : vector<64x64xf32>
    %16 = tpu.matmul %14, %15, %cst_8 {dimension_numbers = #tpu.dot_dimension_numbers<[1], [1], [0], [0], [0, 0, 1, 0], [], []>} : vector<64x128xbf16>, vector<64x128xbf16>, vector<64x64xf32> -> vector<64x64xf32>
    %cst_9 = arith.constant dense<0xFF800000> : vector<64xf32>
    %17 = vector.multi_reduction <maximumf>, %16, %cst_9 [1] : vector<64x64xf32> to vector<64xf32>
    %18 = vector.shape_cast %17 : vector<64xf32> to vector<64x1xf32>
    %19 = vector.broadcast %18 : vector<64x1xf32> to vector<64x64xf32>
    %20 = arith.subf %16, %19 : vector<64x64xf32>
    %21 = math.exp %20 : vector<64x64xf32>
    %cst_10 = arith.constant dense<0.000000e+00> : vector<64xf32>
    %22 = vector.multi_reduction <add>, %21, %cst_10 [1] : vector<64x64xf32> to vector<64xf32>
    %23 = vector.shape_cast %22 : vector<64xf32> to vector<64x1xf32>
    %24 = tpu.reciprocal %23 {approx = true} : vector<64x1xf32> -> vector<64x1xf32>
    %25 = vector.broadcast %24 : vector<64x1xf32> to vector<64x64xf32>
    %26 = arith.mulf %21, %25 : vector<64x64xf32>
    %c0_11 = arith.constant 0 : index
    %c0_12 = arith.constant 0 : index
    %c0_13 = arith.constant 0 : index
    %27 = vector.load %arg9[%c0_11, %c0_12, %c0_13] : memref<1x64x64xf32, #tpu.memory_space<vmem>>, vector<1x64x64xf32>
    %28 = vector.shape_cast %27 : vector<1x64x64xf32> to vector<64x64xf32>
    %29 = vector.shape_cast %26 : vector<64x64xf32> to vector<1x64x64xf32>
    tpu.vector_store %arg9[%c0_11, %c0_12, %c0_13], %29 {strides = array<i32>} : memref<1x64x64xf32, #tpu.memory_space<vmem>>, vector<1x64x64xf32>,
    %30 = arith.truncf %26 : vector<64x64xf32> to vector<64x64xbf16>
    %c0_14 = arith.constant 0 : index
    %c0_15 = arith.constant 0 : index
    %31 = vector.load %arg11[%c0_14, %c0_15] : memref<64x16xbf16, #tpu.memory_space<vmem>>, vector<64x16xbf16>
    %cst_16 = arith.constant dense<0.000000e+00> : vector<64x16xf32>
    %32 = tpu.matmul %30, %31, %cst_16 {dimension_numbers = #tpu.dot_dimension_numbers<[1], [0], [0], [1], [0, 0, 1, 1], [], []>} : vector<64x64xbf16>, vector<64x16xbf16>, vector<64x16xf32> -> vector<64x16xf32>
    %c0_17 = arith.constant 0 : index
    %33 = memref.load %arg7[%c0_17] : memref<1xf32, #tpu.memory_space<smem>>
    %34 = vector.broadcast %33 : f32 to vector<64x16xf32>
    %35 = arith.mulf %34, %32 : vector<64x16xf32>
    %36 = arith.addf %35, %7 : vector<64x16xf32>
    %c0_18 = arith.constant 0 : index
    %c0_19 = arith.constant 0 : index
    %c0_20 = arith.constant 0 : index
    %37 = vector.load %arg8[%c0_18, %c0_19, %c0_20] : memref<1x64x16xf32, #tpu.memory_space<vmem>>, vector<1x64x16xf32>
    %38 = vector.shape_cast %37 : vector<1x64x16xf32> to vector<64x16xf32>
    %39 = vector.shape_cast %36 : vector<64x16xf32> to vector<1x64x16xf32>
    tpu.vector_store %arg8[%c0_18, %c0_19, %c0_20], %39 {strides = array<i32>} : memref<1x64x16xf32, #tpu.memory_space<vmem>>, vector<1x64x16xf32>,
    return
  }
  func.func @transform_0(%arg0: i32, %arg1: i32) -> (i32, i32, i32) {
    %c0_i32 = arith.constant 0 : i32
    %c0_i32_0 = arith.constant 0 : i32
    %c0_i32_1 = arith.constant 0 : i32
    return %arg0, %c0_i32, %c0_i32_0 : i32, i32, i32
  }
  func.func @transform_1(%arg0: i32, %arg1: i32) -> (i32, i32) {
    %c0_i32 = arith.constant 0 : i32
    %c0_i32_0 = arith.constant 0 : i32
    %c0_i32_1 = arith.constant 0 : i32
    return %c0_i32, %c0_i32_0 : i32, i32
  }
  func.func @transform_2(%arg0: i32, %arg1: i32) -> (i32, i32) {
    %c0_i32 = arith.constant 0 : i32
    %c0_i32_0 = arith.constant 0 : i32
    %c0_i32_1 = arith.constant 0 : i32
    return %c0_i32, %c0_i32_0 : i32, i32
  }
  func.func @transform_3(%arg0: i32, %arg1: i32) -> (i32, i32) {
    %c0_i32 = arith.constant 0 : i32
    %c0_i32_0 = arith.constant 0 : i32
    %c0_i32_1 = arith.constant 0 : i32
    return %c0_i32, %c0_i32_0 : i32, i32
  }
  func.func @transform_4(%arg0: i32, %arg1: i32) -> (i32, i32) {
    %c0_i32 = arith.constant 0 : i32
    %c0_i32_0 = arith.constant 0 : i32
    %c0_i32_1 = arith.constant 0 : i32
    return %c0_i32, %c0_i32_0 : i32, i32
  }
  func.func @transform_5(%arg0: i32, %arg1: i32) -> i32 {
    %c0_i32 = arith.constant 0 : i32
    %c0_i32_0 = arith.constant 0 : i32
    return %c0_i32 : i32
  }
  func.func @transform_6(%arg0: i32, %arg1: i32) -> (i32, i32, i32) {
    %c0_i32 = arith.constant 0 : i32
    %c0_i32_0 = arith.constant 0 : i32
    return %arg0, %arg1, %c0_i32 : i32, i32, i32
  }
  func.func @transform_7(%arg0: i32, %arg1: i32) -> (i32, i32, i32) {
    %c0_i32 = arith.constant 0 : i32
    %c0_i32_0 = arith.constant 0 : i32
    return %arg0, %arg1, %c0_i32 : i32, i32, i32
  }
}

</mosaic_0001>

<bundles_post_ra>
// kernel: tpu_custom_call.1
= control target key start
LH: loop header
LB: loop body
LE: loop exit
PB: predicated region body
PF: predicated region fallthrough
CT: control target
= control target key end

     0   :  { %s1571_s0 = inlined_call_operand.vmem [shape: f32[2,64,16], index: 0, kind: input, shape index: {}]   ;;  %s1572_s1 = inlined_call_operand.vmem [shape: bf16[16,128], index: 1, kind: input, shape index: {}]   ;;  %s1573_s2 = inlined_call_operand.vmem [shape: bf16[16,144], index: 2, kind: input, shape index: {}]   ;;  %s1574_s3 = inlined_call_operand.vmem [shape: f32[1,128], index: 3, kind: input, shape index: {}]   ;;  %s1575_s4 = inlined_call_operand.vmem [shape: f32[1,144], index: 4, kind: input, shape index: {}]   ;;  %s1576_s5 = inlined_call_operand.<no memory space> [shape: f32[1], index: 5, kind: input, shape index: {}]   ;;  %s1577_s6 = inlined_call_operand.vmem [shape: f32[2,64,16], index: 6, kind: output, shape index: {0}]   ;;  %s1578_s7 = inlined_call_operand.hbm [shape: f32[2,64,64], index: 7, kind: output, shape index: {1}]  }
   0x1   :  { %13 = sst [smem:[#allocation4]] %s1576_s5 }
   0x2   :  { %14 = vsyncpa [#allocation6], 0 }
   0x3   :  { %16 = vsyncpa [#allocation6 + $0x1], 0  ;;  %s1307_s26 = smov 0   ;;  %s1309_s27 = smov 0  }
   0x4   :  { %s1311_s28 = smov 0   ;;  %s1313_s29 = smov 0  }
   0x5   :  { %s1315_s30 = smov 0   ;;  %s1317_s8 = smov 0  }
   0x6 LB: > { %s989_s5 = sadd.s32 4294967295, %s1258_s8   ;;  %s990_s9 = sadd.s32 4294967294, %s1258_s8   ;;  %s1258_s8 = sphi %s1317_s8, %s22_s8   ;;  %s1254_s30 = sphi %s1315_s30, %s1585_s30   ;;  %s1250_s29 = sphi %s1313_s29, %s1584_s29   ;;  %s1246_s28 = sphi %s1311_s28, %s1583_s28   ;;  %s1242_s27 = sphi %s1309_s27, %s1582_s27   ;;  %s1238_s26 = sphi %s1307_s26, %s1581_s26  }
   0x7   : > { %s34_s10 = sadd.s32 1, %s1254_s30  ;;  %s202_s11 = sadd.s32 1, %s1246_s28 }
   0x8   : > { %p36_p0 = scmp.ge.s32.totalorder %s34_s10, 2  ;;  %p212_p1 = scmp.ne.s32.totalorder %s1246_s28, %s1242_s27 }
   0x9   : > { %p213_p2 = scmp.eq.s32.totalorder %s989_s5, 1  ;;  %p218_p3 = scmp.ne.s32.totalorder %s1242_s27, %s1238_s26 }
   0xa   : > { %s1587_s10 = smov (%p36_p0, %s34_s10), 0  ;;  %p219_p5 = scmp.eq.s32.totalorder %s990_s9, 1 }
   0xb   : > { %p1347_p4 = por %p213_p2, %p212_p1  ;;  %s197_s13 = ssub.s32 %s1254_s30, %s1587_s10 }
   0xc   : > { %p993_p6 = scmp.ge.s32.totalorder %s1258_s8, 1  ;;  %p200_p7 = scmp.eq.s32.totalorder %s197_s13, 0 }
   0xd   : > { %p1354_p8 = por %p219_p5, %p218_p3  ;;  %p260_p9 = scmp.lt.s32.totalorder %s1258_s8, 3 }
   0xe   : > { %s1360_s15 = scalar_select %p200_p7, %s1246_s28, %s202_s11  }
   0xf   : > { %p261_p10 = pnand %p993_p6, %p260_p9 }
  0x10   : > { %v1144_v0 = vld [vmem:[%s1573_s2 + $0x4] ss:$8 sps:$4 sm:$0xff] (!%p261_p10)   ;;  %p301_p11 = scmp.lt.s32.totalorder (!%p261_p10), %s1250_s29, 1  ;;  %v1146_v1 = vld [vmem:[%s1573_s2] ss:$8 sps:$4 sm:$0xff] (!%p261_p10)   ;;  %v1260_v2 = vmov (!%p261_p10), 0   ;;  %v338_v16 = vlaneseq (!%p261_p10) }
  0x11   : > { %264 = sbr.rel (%p261_p10) target bundleno = 1047 (0x417), region = 44  ;;  %403 = vmatprep.mubr.bf16.mxu0 (!%p261_p10), %v1260_v2  ;;  %v1147_v3 = vld [vmem:[%s1572_s1] sm:$0xff] (!%p261_p10)   ;;  %371 = vmatprep.subr.bf16.mxu0 (!%p261_p10), %v1144_v0  ;;  %vm358_vm0 = vcmask (!%p261_p10), 130048   ;;  %vm640_vm1 = vcmask (!%p261_p10), 523264   ;;  %s298_s17 = sand.u32 (!%p261_p10), 1, %s1242_s27  }
  0x12   : > { %372 = vmatpush1.bf16.msra.mxu0 (!%p261_p10), %v1146_v1  ;;  %1044 = vmatprep.subr.bf16.mxu1 (!%p261_p10), %v1147_v3  ;;  %v339_v17 = vshrl.u32 (!%p261_p10), %v338_v16, 7  ;;  %v336_v19 = vld [vmem:[%s1575_s4] sm:$0x3] (!%p261_p10)  ;;  %s994_s18 = sshll.u32 (!%p261_p10), %s298_s17, 6  ;;  %s1022_s20 = sshll.u32 (!%p261_p10), %s1250_s29, 10 }
  0x13   : > { %1045 = vmatpush3.bf16.msra.mxu1 (!%p261_p10), %v1147_v3  ;;  %v1005_v22 = vld [vmem:[%s1574_s3] ss:$0 sm:$0xff] (!%p261_p10)  ;;  %s1471_s19 = scalar_lea.vmem (!%p261_p10), [#allocation5], %s994_s18  ;;  %s1504_s9 = scalar_lea.sflag (!%p261_p10), [#allocation6], %s298_s17 }
  0x14   : > { %v340_v18 = vsub.s32 (!%p261_p10), 0, %v339_v17  ;;  %v344_v20 = vsub.s32 (!%p261_p10), 1, %v339_v17  ;;  %s877_s21 = sshll.u32 (!%p261_p10), %s1471_s19, 4  ;;  %s1500_s21 = int_to_ptr.vmem [resolvable:$true] %s877_s21 }
  0x15   : > { %s1180_s11 = scalar_lea.vmem (!%p261_p10), %s1500_s21, 1024 }
  0x16   : > { %v1416_v21 = vrot.slane (!%p261_p10), %v336_v19, %v340_v18  ;;  %v1421_v24 = vrot.slane (!%p261_p10), %v336_v19, %v344_v20  ;;  %p1181_p12 = scmp.ne.s32.totalorder (!%p261_p10), %s1500_s21, %s1180_s11 }
  0x18   : > { %s1373_s22 = scalar_select %p301_p11, %s1250_s29, 1 }
  0x19   : > { %p1182_p13 = pnand %p1181_p12, %p1347_p4  ;;  %s1261_s29 = smov [#allocation5]  }
  0x1a   : > { %s1020_s23 = sshll.u32 %s1373_s22, 6  ;;  %s1184_s13 = sshll.u32 %s1261_s29, 4  ;;  %s1185_s13 = int_to_ptr.vmem [resolvable:$false] %s1184_s13 }
  0x1b   : > { %s305_s5 = scalar_lea.vmem %s1571_s0, %s1020_s23  ;;  %p1183_p0 = pneg %p1182_p13 }
  0x1c   : > { %v1381_v4 = vld [vmem:[%s305_s5] sm:$0xff]  ;;  %v1383_v5 = vld [vmem:[%s305_s5 + $0x8] sm:$0xff]  ;;  %v1385_v6 = vld [vmem:[%s305_s5 + $0x10] sm:$0xff]  ;;  %s1186_s16 = scalar_lea.vmem %s1185_s13, 2048  ;;  %p1187_p1 = scmp.lt.s32.totalorder %s1500_s21, %s1185_s13 }
  0x1d   : > { %v330_v7 = vpack.c.bf16 %v1383_v5, %v1381_v4  ;;  %v1389_v8 = vld [vmem:[%s305_s5 + $0x18] sm:$0xff]  ;;  %v1391_v9 = vld [vmem:[%s305_s5 + $0x20] sm:$0xff]  ;;  %v1393_v10 = vld [vmem:[%s305_s5 + $0x28] sm:$0xff]  ;;  %p1188_p2 = scmp.lt.s32.totalorder %s1186_s16, %s1180_s11 }
  0x1e   : > { %v331_v11 = vpack.c.bf16 %v1389_v8, %v1385_v6  ;;  %v332_v12 = vpack.c.bf16 %v1393_v10, %v1391_v9  ;;  %v1403_v13 = vld [vmem:[%s305_s5 + $0x30] sm:$0xff]  ;;  %v1405_v14 = vld [vmem:[%s305_s5 + $0x38] sm:$0xff]  ;;  %s1498_s5 = scalar_lea.hbm %s1578_s7, %s1022_s20 }
  0x1f   : > { %1001 = vmatmul.mubr.msk.bf16.vlgmr.msra.gmra.mrb[0].mxu0 %vm358_vm0, %v330_v7  ;;  %1046 = vmatprep.mubr.msk.bf16.mxu1 %vm358_vm0, %v330_v7  ;;  %v333_v15 = vpack.c.bf16 %v1405_v14, %v1403_v13  ;;  %p1189_p3 = por %p1188_p2, %p1187_p1 }
  0x20   : > { %413 = vmatprep.mubr.bf16.mxu0 %v1260_v2  ;;  %1047 = vmatmul.mubr.msk.bf16.vlgmr.msra.gmra.mrb[0].mxu1 %vm358_vm0, %v331_v11 }
  0x21   : > { %1050 = vmatprep.mubr.msk.bf16.mxu1 %vm358_vm0, %v332_v12  ;;  %p1190_p5 = pnand %p1189_p3, %p1183_p0 }
  0x27   : > { %1002 = vmatmul.mubr.msk.bf16.gmra.mrb[4].mxu0 %vm358_vm0, %v331_v11 }
  0x28   : > { %423 = vmatprep.mubr.bf16.mxu0 %v1260_v2  ;;  %1051 = vmatmul.mubr.msk.bf16.gmra.mrb[4].mxu1 %vm358_vm0, %v333_v15 }
  0x2f   : > { %1003 = vmatmul.mubr.msk.bf16.gmra.mrb[8].mxu0 %vm358_vm0, %v332_v12 }
  0x30   : > { %433 = vmatprep.mubr.bf16.mxu0 %v1260_v2 }
  0x37   : > { %1004 = vmatmul.mubr.msk.bf16.gmra.mrb[12].mxu0 %vm358_vm0, %v333_v15 }
  0xf2   : > { %v405_v23 = vpop.f32.mrb[0].mxu0 }
  0xf3   : > { %v407_v25 = vpop.f32.mrb[1].mxu0  ;;  %v1048_v26 = vpop.f32.mrb[0].mxu1  ;;  %v406_v30 = vadd.f32 %v405_v23, %v1416_v21 }
  0xf4   : > { %v409_v27 = vpop.f32.mrb[2].mxu0  ;;  %v1423_v28 = vadd.f32 %v1048_v26, %v1005_v22  ;;  %v536_v29 = vpop.f32.mrb[1].mxu1  ;;  %v408_v35 = vadd.f32 %v407_v25, %v1421_v24 }
  0xf5   : > { %v410_v31 = vadd.f32 %v409_v27, %v1416_v21  ;;  %v411_v32 = vpop.f32.mrb[3].mxu0  ;;  %v537_v33 = vadd.f32 %v1005_v22, %v536_v29  ;;  %v1049_v34 = vpop.f32.mrb[2].mxu1 }
  0xf6   : > { %v412_v36 = vadd.f32 %v411_v32, %v1421_v24  ;;  %v1429_v37 = vadd.f32 %v1049_v34, %v1005_v22  ;;  %v539_v38 = vpop.f32.mrb[3].mxu1 }
  0xf7   : > { %v444_v39 = vpack.c.bf16 %v410_v31, %v406_v30  ;;  %v540_v40 = vadd.f32 %v1005_v22, %v539_v38 }
  0xf8   : > { %v452_v41 = vpack.c.bf16 %v412_v36, %v408_v35  ;;  %v568_v42 = vpack.c.bf16 %v1429_v37, %v1423_v28 }
  0xf9   : > { %1054 = vmatprep.subr.bf16.mxu0 %v444_v39  ;;  %v567_v43 = vpack.c.bf16 %v540_v40, %v537_v33 }
  0xfa   : > { %456 = vst.msk [vmem:[#allocation3] sm:$0xff] %vm358_vm0, %v452_v41  ;;  %v415_v44 = vpop.f32.mrb[4].mxu0  ;;  %1055 = vmatpush3.bf16.xpose.msra.mxu0 %v444_v39 }
  0xfb   : > { %v417_v45 = vpop.f32.mrb[5].mxu0  ;;  %1062 = vmatprep.mubr.bf16.mxu0 %v567_v43  ;;  %v1052_v46 = vpop.f32.mrb[4].mxu1  ;;  %v416_v50 = vadd.f32 %v415_v44, %v1416_v21 }
  0xfc   : > { %v419_v47 = vpop.f32.mrb[6].mxu0  ;;  %v561_v48 = vadd.f32 %v1052_v46, %v1005_v22  ;;  %v552_v49 = vpop.f32.mrb[5].mxu1  ;;  %v418_v55 = vadd.f32 %v417_v45, %v1421_v24 }
  0xfd   : > { %v420_v51 = vadd.f32 %v419_v47, %v1416_v21  ;;  %v421_v52 = vpop.f32.mrb[7].mxu0  ;;  %v553_v53 = vadd.f32 %v1005_v22, %v552_v49  ;;  %v1053_v54 = vpop.f32.mrb[6].mxu1 }
  0xfe   : > { %v422_v56 = vadd.f32 %v421_v52, %v1421_v24  ;;  %v564_v57 = vadd.f32 %v1053_v54, %v1005_v22  ;;  %v555_v58 = vpop.f32.mrb[7].mxu1 }
  0xff   : > { %v445_v59 = vpack.c.bf16 %v420_v51, %v416_v50  ;;  %v556_v60 = vadd.f32 %v1005_v22, %v555_v58 }
 0x100   : > { %v453_v61 = vpack.c.bf16 %v422_v56, %v418_v55  ;;  %v570_v62 = vpack.c.bf16 %v564_v57, %v561_v48 }
 0x101   : > { %1056 = vmatprep.subr.bf16.mxu0 %v445_v59  ;;  %v741_v63 = vld [vmem:[#allocation3] sm:$0xff]  ;;  %v569_v0 = vpack.c.bf16 %v556_v60, %v553_v53 }
 0x102   : > { %457 = vst.msk [vmem:[#allocation3 + $0x8] sm:$0xff] %vm358_vm0, %v453_v61  ;;  %v425_v1 = vpop.f32.mrb[8].mxu0  ;;  %1057 = vmatpush3.bf16.xpose.msra.mxu0 %v445_v59  ;;  %1070 = vmatprep.subr.bf16.mxu1 %v741_v63 }
 0x103   : > { %v427_v2 = vpop.f32.mrb[9].mxu0  ;;  %1071 = vmatpush3.bf16.msra.mxu1 %v741_v63  ;;  %v426_v7 = vadd.f32 %v425_v1, %v1416_v21 }
 0x104   : > { %v429_v3 = vpop.f32.mrb[10].mxu0  ;;  %v428_v15 = vadd.f32 %v427_v2, %v1421_v24 }
 0x105   : > { %v430_v11 = vadd.f32 %v429_v3, %v1416_v21  ;;  %v431_v12 = vpop.f32.mrb[11].mxu0 }
 0x106   : > { %v432_v16 = vadd.f32 %v431_v12, %v1421_v24 }
 0x107   : > { %v446_v17 = vpack.c.bf16 %v430_v11, %v426_v7 }
 0x108   : > { %v454_v18 = vpack.c.bf16 %v432_v16, %v428_v15 }
 0x109   : > { %1058 = vmatprep.subr.bf16.mxu0 %v446_v17  ;;  %v742_v19 = vld [vmem:[#allocation3 + $0x8] sm:$0xff] }
 0x10a   : > { %458 = vst.msk [vmem:[#allocation3 + $0x10] sm:$0xff] %vm358_vm0, %v454_v18  ;;  %v435_v20 = vpop.f32.mrb[12].mxu0  ;;  %1059 = vmatpush3.bf16.xpose.msra.mxu0 %v446_v17  ;;  %1072 = vmatprep.subr.bf16.mxu1 %v742_v19 }
 0x10b   : > { %v437_v22 = vpop.f32.mrb[13].mxu0  ;;  %1073 = vmatpush3.bf16.msra.mxu1 %v742_v19  ;;  %v436_v25 = vadd.f32 %v435_v20, %v1416_v21 }
 0x10c   : > { %v439_v23 = vpop.f32.mrb[14].mxu0  ;;  %v438_v29 = vadd.f32 %v437_v22, %v1421_v24 }
 0x10d   : > { %v440_v26 = vadd.f32 %v439_v23, %v1416_v21  ;;  %v441_v27 = vpop.f32.mrb[15].mxu0 }
 0x10e   : > { %v442_v30 = vadd.f32 %v441_v27, %v1421_v24 }
 0x10f   : > { %v447_v31 = vpack.c.bf16 %v440_v26, %v436_v25 }
 0x110   : > { %v455_v32 = vpack.c.bf16 %v442_v30, %v438_v29 }
 0x111   : > { %1060 = vmatprep.subr.bf16.mxu0 %v447_v31  ;;  %v743_v33 = vld [vmem:[#allocation3 + $0x10] sm:$0xff] }
 0x112   : > { %459 = vst.msk [vmem:[#allocation3 + $0x18] sm:$0xff] %vm358_vm0, %v455_v32  ;;  %1061 = vmatpush3.bf16.xpose.msra.mxu0 %v447_v31  ;;  %1074 = vmatprep.subr.bf16.mxu1 %v743_v33 }
 0x113   : > { %1075 = vmatpush3.bf16.msra.mxu1 %v743_v33 }
 0x119   : > { %1063 = vmatmul.mubr.bf16.vlgmr.msra.gmra.mrb[16].mxu0 %v568_v42  ;;  %v744_v34 = vld [vmem:[#allocation3 + $0x18] sm:$0xff] }
 0x11a   : > { %1076 = vmatprep.subr.bf16.mxu1 %v744_v34  ;;  %1066 = vmatprep.mubr.bf16.mxu0 %v569_v0 }
 0x11b   : > { %1077 = vmatpush3.bf16.msra.mxu1 %v744_v34 }
 0x121   : > { %1067 = vmatmul.mubr.bf16.gmra.mrb[20].mxu0 %v570_v62 }
 0x1ec   : > { %v1064_v21 = vpop.f32.mrb[16].mxu0 }
 0x1ed   : > { %v609_v24 = vpop.f32.mrb[17].mxu0  ;;  %v647_v35 = vsel %vm640_vm1, %v1064_v21, -inf }
 0x1ee   : > { %648 = vmax.xlane.f32.xlu1 %v647_v35  ;;  %v1065_v36 = vpop.f32.mrb[18].mxu0  ;;  %v641_v38 = vsel %vm640_vm1, %v609_v24, -inf }
 0x1ef   : > { %642 = vmax.xlane.f32.xlu0 %v641_v38  ;;  %v612_v39 = vpop.f32.mrb[19].mxu0  ;;  %v650_v40 = vsel %vm640_vm1, %v1065_v36, -inf }
 0x1f0   : > { %v644_v28 = vsel %vm640_vm1, %v612_v39, -inf }
 0x1f2   : > { %651 = vmax.xlane.f32.xlu1 %v650_v40 }
 0x1f3   : > { %645 = vmax.xlane.f32.xlu0 %v644_v28 }
 0x1f4   : > { %v1068_v37 = vpop.f32.mrb[20].mxu0 }
 0x1f5   : > { %v625_v41 = vpop.f32.mrb[21].mxu0  ;;  %v659_v46 = vsel %vm640_vm1, %v1068_v37, -inf }
 0x1f6   : > { %v1069_v42 = vpop.f32.mrb[22].mxu0  ;;  %v653_v43 = vsel %vm640_vm1, %v625_v41, -inf }
 0x1f7   : > { %654 = vmax.xlane.f32.xlu0 %v653_v43  ;;  %v628_v44 = vpop.f32.mrb[23].mxu0  ;;  %v662_v47 = vsel %vm640_vm1, %v1069_v42, -inf }
 0x1f8   : > { %v656_v45 = vsel %vm640_vm1, %v628_v44, -inf }
 0x1f9   : > { %657 = vmax.xlane.f32.xlu1 %v656_v45 }
 0x1fb   : > { %660 = vmax.xlane.f32.xlu0 %v659_v46 }
 0x1fd   : > { %663 = vmax.xlane.f32.xlu1 %v662_v47 }
 0x27b   : > { %v649_v48 = vpop.xlane.xlu1 %648 }
 0x27c   : > { %v667_v49 = vsub.f32 %v1064_v21, %v649_v48  ;;  %v643_v50 = vpop.xlane.xlu0 %642 }
 0x27d   : > { %v665_v51 = vsub.f32 %v609_v24, %v643_v50 }
 0x27e   : > { %v677_v52 = vmul.f32 1.442695, %v667_v49 }
 0x27f   : > { %v673_v53 = vmul.f32 1.442695, %v665_v51  ;;  %v652_v54 = vpop.xlane.xlu1 %651 }
 0x280   : > { %v668_v55 = vsub.f32 %v1065_v36, %v652_v54  ;;  %v646_v56 = vpop.xlane.xlu0 %645 }
 0x281   : > { %1148 = vpow2.f32 %v673_v53  ;;  %v666_v57 = vsub.f32 %v612_v39, %v646_v56 }
 0x282   : > { %1150 = vpow2.f32 %v677_v52  ;;  %v679_v58 = vmul.f32 1.442695, %v668_v55 }
 0x283   : > { %v675_v59 = vmul.f32 1.442695, %v666_v57 }
 0x284   : > { %v655_v60 = vpop.xlane.xlu0 %654 }
 0x285   : > { %1152 = vpow2.f32 %v675_v59  ;;  %v669_v61 = vsub.f32 %v625_v41, %v655_v60 }
 0x286   : > { %v658_v62 = vpop.xlane.xlu1 %657  ;;  %1154 = vpow2.f32 %v679_v58 }
 0x287   : > { %v681_v63 = vmul.f32 1.442695, %v669_v61  ;;  %v670_v0 = vsub.f32 %v628_v44, %v658_v62 }
 0x288   : > { %v661_v1 = vpop.xlane.xlu0 %660 }
 0x289   : > { %1156 = vpow2.f32 %v681_v63  ;;  %v683_v2 = vmul.f32 1.442695, %v670_v0  ;;  %v671_v3 = vsub.f32 %v1068_v37, %v661_v1 }
 0x28a   : > { %v664_v7 = vpop.xlane.xlu1 %663 }
 0x28b   : > { %v1149_v11 = vpop.eup %1148  ;;  %1158 = vpow2.f32 %v683_v2  ;;  %v685_v12 = vmul.f32 1.442695, %v671_v3  ;;  %v672_v15 = vsub.f32 %v1069_v42, %v664_v7 }
 0x28c   : > { %v689_v16 = vsel %vm640_vm1, %v1149_v11, 0.0  ;;  %v1151_v17 = vpop.eup %1150 }
 0x28d   : > { %1160 = vpow2.f32 %v685_v12  ;;  %v687_v18 = vmul.f32 1.442695, %v672_v15  ;;  %690 = vadd.xlane.f32.xlu0 %v689_v16  ;;  %v695_v20 = vsel %vm640_vm1, %v1151_v17, 0.0 }
 0x28f   : > { %v1153_v19 = vpop.eup %1152  ;;  %1162 = vpow2.f32 %v687_v18 }
 0x290   : > { %v692_v22 = vsel %vm640_vm1, %v1153_v19, 0.0  ;;  %v1155_v23 = vpop.eup %1154 }
 0x291   : > { %696 = vadd.xlane.f32.xlu0 %v695_v20  ;;  %693 = vadd.xlane.f32.xlu1 %v692_v22  ;;  %v698_v27 = vsel %vm640_vm1, %v1155_v23, 0.0 }
 0x293   : > { %v1157_v25 = vpop.eup %1156 }
 0x294   : > { %v701_v26 = vsel %vm640_vm1, %v1157_v25, 0.0 }
 0x295   : > { %v1159_v29 = vpop.eup %1158  ;;  %702 = vadd.xlane.f32.xlu0 %v701_v26  ;;  %699 = vadd.xlane.f32.xlu1 %v698_v27 }
 0x296   : > { %v704_v32 = vsel %vm640_vm1, %v1159_v29, 0.0 }
 0x297   : > { %v1161_v30 = vpop.eup %1160 }
 0x298   : > { %v707_v31 = vsel %vm640_vm1, %v1161_v30, 0.0 }
 0x299   : > { %v1163_v33 = vpop.eup %1162  ;;  %708 = vadd.xlane.f32.xlu0 %v707_v31  ;;  %705 = vadd.xlane.f32.xlu1 %v704_v32 }
 0x29a   : > { %v710_v34 = vsel %vm640_vm1, %v1163_v33, 0.0 }
 0x29d   : > { %711 = vadd.xlane.f32.xlu1 %v710_v34 }
 0x31a   : > { %v691_v21 = vpop.xlane.xlu0 %690 }
 0x31b   : > { %1164 = vrcp.f32 %v691_v21 }
 0x31e   : > { %v697_v24 = vpop.xlane.xlu0 %696  ;;  %v694_v35 = vpop.xlane.xlu1 %693 }
 0x31f   : > { %1166 = vrcp.f32 %v697_v24 }
 0x320   : > { %1168 = vrcp.f32 %v694_v35 }
 0x322   : > { %v703_v36 = vpop.xlane.xlu0 %702  ;;  %v700_v38 = vpop.xlane.xlu1 %699 }
 0x323   : > { %1170 = vrcp.f32 %v703_v36 }
 0x324   : > { %1172 = vrcp.f32 %v700_v38 }
 0x325   : > { %v1165_v39 = vpop.eup %1164 }
 0x326   : > { %v709_v40 = vpop.xlane.xlu0 %708  ;;  %v706_v28 = vpop.xlane.xlu1 %705  ;;  %v721_v37 = vmul.f32 %v1165_v39, %v1149_v11 }
 0x327   : > { %1174 = vrcp.f32 %v709_v40 }
 0x328   : > { %1176 = vrcp.f32 %v706_v28  ;;  %729 = vst.msk [vmem:[%s1471_s19] sm:$0xff] %vm640_vm1, %v721_v37 }
 0x329   : > { %v1167_v41 = vpop.eup %1166 }
 0x32a   : > { %v1169_v42 = vpop.eup %1168  ;;  %v723_v43 = vmul.f32 %v1167_v41, %v1151_v17  ;;  %v712_v44 = vpop.xlane.xlu1 %711 }
 0x32b   : > { %1178 = vrcp.f32 %v712_v44  ;;  %v722_v45 = vmul.f32 %v1169_v42, %v1153_v19 }
 0x32c   : > { %731 = vst.msk [vmem:[%s1471_s19 + $0x10] sm:$0xff] %vm640_vm1, %v723_v43 }
 0x32d   : > { %v1171_v46 = vpop.eup %1170  ;;  %730 = vst.msk [vmem:[%s1471_s19 + $0x8] sm:$0xff] %vm640_vm1, %v722_v45  ;;  %v737_v47 = vpack.c.bf16 %v722_v45, %v721_v37 }
 0x32e   : > { %v1173_v48 = vpop.eup %1172  ;;  %v725_v49 = vmul.f32 %v1171_v46, %v1157_v25 }
 0x32f   : > { %v724_v50 = vmul.f32 %v1173_v48, %v1155_v23  ;;  %1078 = vmatprep.mubr.msk.bf16.mxu1 %vm640_vm1, %v737_v47 }
 0x330   : > { %733 = vst.msk [vmem:[%s1471_s19 + $0x20] sm:$0xff] %vm640_vm1, %v725_v49 }
 0x331   : > { %v1175_v51 = vpop.eup %1174  ;;  %732 = vst.msk [vmem:[%s1471_s19 + $0x18] sm:$0xff] %vm640_vm1, %v724_v50  ;;  %v738_v52 = vpack.c.bf16 %v724_v50, %v723_v43 }
 0x332   : > { %v1177_v53 = vpop.eup %1176  ;;  %v727_v54 = vmul.f32 %v1175_v51, %v1161_v30 }
 0x333   : > { %1079 = vmatmul.mubr.msk.bf16.vlgmr.msra.gmra.mrb[8].mxu1 %vm640_vm1, %v738_v52  ;;  %v726_v55 = vmul.f32 %v1177_v53, %v1159_v29 }
 0x334   : > { %735 = vst.msk [vmem:[%s1471_s19 + $0x30] sm:$0xff] %vm640_vm1, %v727_v54 }
 0x335   : > { %v1179_v56 = vpop.eup %1178  ;;  %734 = vst.msk [vmem:[%s1471_s19 + $0x28] sm:$0xff] %vm640_vm1, %v726_v55  ;;  %v739_v57 = vpack.c.bf16 %v726_v55, %v725_v49 }
 0x336   : > { %v728_v58 = vmul.f32 %v1179_v56, %v1163_v33 }
 0x337   : > { %1082 = vmatprep.mubr.msk.bf16.mxu1 %vm640_vm1, %v739_v57 }
 0x338   : > { %736 = vst.msk [vmem:[%s1471_s19 + $0x38] sm:$0xff] %vm640_vm1, %v728_v58  ;;  %v740_v59 = vpack.c.bf16 %v728_v58, %v727_v54 }
 0x33b   : > { %1083 = vmatmul.mubr.msk.bf16.gmra.mrb[12].mxu1 %vm640_vm1, %v740_v59 }
 0x33c   : > { %1193 = shalt.err (!%p1190_p5)
}
 0x33d   : > { %s1194_s17 = scalar_lea.hbm %s1498_s5, 1024  ;;  %s1198_s20 = scalar_lea.hbm %s1578_s7, 2048 }
 0x33e   : > { %p1195_p6 = scmp.ne.s32.totalorder %s1498_s5, %s1194_s17  ;;  %p1199_p10 = scmp.lt.u32.totalorder %s1498_s5, %s1578_s7 }
 0x33f   : > { %p1200_p11 = scmp.lt.u32.totalorder %s1198_s20, %s1194_s17  ;;  %p1202_p13 = scmp.lt.u32.totalorder %s1194_s17, %s1498_s5 }
 0x340   : > { %p1196_p7 = pnand %p1195_p6, %p1347_p4 }
 0x341   : > { %p1201_p12 = por %p1200_p11, %p1199_p10 }
 0x342   : > { %p1197_p9 = pneg %p1196_p7 }
 0x343   : > { %p1203_p0 = por %p1202_p13, %p1201_p12 }
 0x345   : > { %p1204_p1 = pnand %p1203_p0, %p1197_p9 }
 0x347   : > { %1207 = shalt.err (!%p1204_p1)
}
 0x348   : > { %s1262_s11 = smov 128   ;;  %s1263_s29 = smov 8  }
 0x349   : > { %1086 = dma.vmem_to_hbm [thread:$0]  (%p1347_p4), %s1500_s21, 1024, %s1498_s5, %s1504_s9, %s1262_s11, %s1262_s11, %s1263_s29  }
 0x34a   : > { %s822_s13 = sld [smem:[#allocation4]]  ;;  %s314_s18 = scalar_lea.vmem %s1577_s6, %s1020_s23 }
 0x350   : > { %v823_v60 = vstv %s822_s13 }
 0x406   : > { %v1080_v61 = vpop.f32.mrb[8].mxu1 }
 0x407   : > { %v826_v62 = vmul.f32 %v1080_v61, %v823_v60  ;;  %v791_v63 = vpop.f32.mrb[9].mxu1 }
 0x408   : > { %v824_v0 = vmul.f32 %v823_v60, %v791_v63  ;;  %v1081_v1 = vpop.f32.mrb[10].mxu1 }
 0x409   : > { %v834_v2 = vadd.f32 %v826_v62, %v1385_v6  ;;  %v827_v3 = vmul.f32 %v1081_v1, %v823_v60  ;;  %v794_v7 = vpop.f32.mrb[11].mxu1 }
 0x40a   : > { %v832_v11 = vadd.f32 %v824_v0, %v1381_v4  ;;  %v825_v12 = vmul.f32 %v823_v60, %v794_v7 }
 0x40b   : > { %842 = vst.msk [vmem:[%s314_s18 + $0x10] sm:$0xff] %vm358_vm0, %v834_v2  ;;  %v835_v15 = vadd.f32 %v827_v3, %v1389_v8 }
 0x40c   : > { %840 = vst.msk [vmem:[%s314_s18] sm:$0xff] %vm358_vm0, %v832_v11  ;;  %v833_v16 = vadd.f32 %v825_v12, %v1383_v5 }
 0x40d   : > { %843 = vst.msk [vmem:[%s314_s18 + $0x18] sm:$0xff] %vm358_vm0, %v835_v15 }
 0x40e   : > { %841 = vst.msk [vmem:[%s314_s18 + $0x8] sm:$0xff] %vm358_vm0, %v833_v16  ;;  %v1084_v17 = vpop.f32.mrb[12].mxu1 }
 0x40f   : > { %v830_v18 = vmul.f32 %v1084_v17, %v823_v60  ;;  %v807_v6 = vpop.f32.mrb[13].mxu1 }
 0x410   : > { %v828_v19 = vmul.f32 %v823_v60, %v807_v6  ;;  %v1085_v20 = vpop.f32.mrb[14].mxu1 }
 0x411   : > { %v838_v4 = vadd.f32 %v830_v18, %v1403_v13  ;;  %v831_v22 = vmul.f32 %v1085_v20, %v823_v60  ;;  %v810_v23 = vpop.f32.mrb[15].mxu1 }
 0x412   : > { %v836_v25 = vadd.f32 %v828_v19, %v1391_v9  ;;  %v829_v8 = vmul.f32 %v823_v60, %v810_v23 }
 0x413   : > { %846 = vst.msk [vmem:[%s314_s18 + $0x30] sm:$0xff] %vm358_vm0, %v838_v4  ;;  %v839_v5 = vadd.f32 %v831_v22, %v1405_v14 }
 0x414   : > { %844 = vst.msk [vmem:[%s314_s18 + $0x20] sm:$0xff] %vm358_vm0, %v836_v25  ;;  %v837_v26 = vadd.f32 %v829_v8, %v1393_v10 }
 0x415   : > { %847 = vst.msk [vmem:[%s314_s18 + $0x38] sm:$0xff] %vm358_vm0, %v839_v5 }
 0x416   : > { %845 = vst.msk [vmem:[%s314_s18 + $0x28] sm:$0xff] %vm358_vm0, %v837_v26 }
 0x417 PF: > { %p1092_p4 = scmp.ge.s32.totalorder %s1258_s8, 2  ;;  %s904_s12 = sand.u32 1, %s1238_s26  }
 0x418   : > { %s905_s22 = scalar_lea.sflag [#allocation6], %s904_s12 }
 0x419   : > { %p1089_p2 = pnand %p1092_p4, %p1354_p8 }
 0x41b   : > { %1233 = dma.done.wait (!%p1089_p2), %s905_s22, 1024  }
 0x41c   : > { %1235 = vsyncadd (!%p1089_p2), %s905_s22, 4294966272  ;;  %s22_s8 = sadd.s32 1, %s1258_s8   ;;  %s1581_s26 = smov %s1242_s27 }
 0x41d   : > { %p19_p3 = scmp.ge.s32.totalorder %s22_s8, 4   ;;  %s1582_s27 = smov %s1246_s28 }
 0x41e   : > { %s1583_s28 = smov %s1360_s15  ;;  %s1584_s29 = smov %s1254_s30 }
 0x41f   : > { %s1585_s30 = smov %s1587_s10  ;;  %21 = sbr.rel (!%p19_p3) target bundleno = 6 (0x6), region = 96 }
 0x426   :  { %910 = vsyncpa [#allocation6], 1 }
 0x427   :  { %912 = vsyncpa [#allocation6 + $0x1], 1 }

</bundles_post_ra>
